<compile_context>
chip_gen: v6e
topology: v6e:2x2x1
jax: 0.10.0
libtpu: 0.0.40
codegen_flags: <defaults>
</compile_context>

<pallas_src>
import functools

import numpy as np
import jax
import jax.numpy as jnp
from jax.experimental import pallas as pl
from jax.experimental.pallas import tpu as pltpu

BN_EPS = 1e-5


def _down_kernel(x_ref, sel_ref, msk_ref, w1_ref, s1_ref, b1_ref,
                 w2_ref, s2_ref, b2_ref, o_ref, p1_ref, p2_ref, *, wp):
    w_in = 2 * wp  # width of the un-pooled image

    # ---- MaxPool2d(2) on the (Cin, H*W) lane-flattened slab ----------------------
    x = x_ref[0]                                          # (Cin, H*W)
    m = jnp.maximum(x, jnp.roll(x, -1, axis=1))           # pair-max along W
    m = jnp.maximum(m, jnp.roll(m, -w_in, axis=1))        # pair-max along H
    # Exact 0/1 selection matmul picks the top-left corner of every 2x2 window and
    # compacts to the pooled lane layout: (Cin, H*W) @ (H*W, Hp*Wp) -> (Cin, Hp*Wp).
    pooled = jnp.dot(m, sel_ref[...], preferred_element_type=jnp.float32)

    # ---- im2col: 9 shifted+masked taps -> (9*C, S) patch matrix in VMEM ----------
    def im2col(src, dst_ref):
        c = src.shape[0]
        for ky in range(3):
            for kx in range(3):
                k = ky * 3 + kx
                d = (ky - 1) * wp + (kx - 1)              # flattened-lane shift
                if d == 0:                                 # center tap: no shift/mask
                    tap = src
                else:
                    # roll brings pixel (y+dy, x+dx) onto lane (y, x); the 0/1 mask
                    # zeroes out-of-image and row-crossing (wrapped) positions.
                    tap = jnp.roll(src, -d, axis=1) * msk_ref[k:k + 1, :]
                dst_ref[k * c:(k + 1) * c, :] = tap        # contiguous row-slab store
        return dst_ref[...]

    # ---- conv1 (3x3, pad=1) as a single MXU matmul + folded BN + ReLU ------------
    p1 = im2col(pooled, p1_ref)                                          # (9*Cin, S)
    a1 = jnp.dot(w1_ref[...], p1, preferred_element_type=jnp.float32)    # (Cmid, S)
    h1 = jnp.maximum(a1 * s1_ref[...] + b1_ref[...], 0.0)

    # ---- conv2 (3x3, pad=1) + folded BN + ReLU -----------------------------------
    p2 = im2col(h1, p2_ref)                                              # (9*Cmid, S)
    a2 = jnp.dot(w2_ref[...], p2, preferred_element_type=jnp.float32)    # (Cout, S)
    o_ref[0] = jnp.maximum(a2 * s2_ref[...] + b2_ref[...], 0.0).astype(o_ref.dtype)


def _fold_bn(conv_bias, gamma, beta, mean, var):
    """Fold conv bias + inference BatchNorm into per-channel scale/bias, shape (C, 1)."""
    scale = gamma / jnp.sqrt(var + BN_EPS)
    bias = (conv_bias - mean) * scale + beta
    return (scale.reshape(-1, 1).astype(jnp.float32),
            bias.reshape(-1, 1).astype(jnp.float32))


def _pool_sel_and_tap_masks(H, W):
    """Compile-time constants: stride-2 corner-selection matrix and 3x3 tap validity masks."""
    Hp, Wp = H // 2, W // 2
    S_in, S = H * W, Hp * Wp
    s = np.arange(S)
    y, x = s // Wp, s % Wp
    src = (2 * y) * W + 2 * x                                  # top-left corner lane
    sel = (np.arange(S_in)[:, None] == src[None, :]).astype(np.float32)   # (H*W, S)
    msk = np.ones((9, S), np.float32)
    for ky in range(3):
        for kx in range(3):
            dy, dx = ky - 1, kx - 1
            valid = ((y + dy >= 0) & (y + dy < Hp) & (x + dx >= 0) & (x + dx < Wp))
            msk[ky * 3 + kx] = valid.astype(np.float32)
    return jnp.asarray(sel), jnp.asarray(msk)


def down_pallas(x_nchw, p):
    """x_nchw: (N, Cin, H, W) f32.  p: dict of raw Conv (OIHW) + BatchNorm parameters."""
    N, Cin, H, W = x_nchw.shape
    assert H % 2 == 0 and W % 2 == 0
    Hp, Wp = H // 2, W // 2
    S_in, S = H * W, Hp * Wp
    Cmid = p["w1"].shape[0]
    Cout = p["w2"].shape[0]

    s1, b1 = _fold_bn(p["bc1"], p["g1"], p["be1"], p["m1"], p["v1"])
    s2, b2 = _fold_bn(p["bc2"], p["g2"], p["be2"], p["m2"], p["v2"])

    # OIHW -> (Cout, ky,kx,ci)-flattened, matching the im2col row order (tap-major, ci-minor).
    w1r = jnp.transpose(p["w1"], (0, 2, 3, 1)).reshape(Cmid, 9 * Cin).astype(jnp.float32)
    w2r = jnp.transpose(p["w2"], (0, 2, 3, 1)).reshape(Cout, 9 * Cmid).astype(jnp.float32)

    sel, msk = _pool_sel_and_tap_masks(H, W)

    # Free, contiguous reshape only: channels on sublanes, flattened spatial on lanes.
    x_flat = x_nchw.reshape(N, Cin, S_in)

    grid_spec = pltpu.PrefetchScalarGridSpec(
        num_scalar_prefetch=0,
        grid=(N,),
        in_specs=[
            pl.BlockSpec((1, Cin, S_in), lambda n: (n, 0, 0)),      # input slab
            pl.BlockSpec((S_in, S), lambda n: (0, 0)),              # pool selection
            pl.BlockSpec((9, S), lambda n: (0, 0)),                 # tap masks
            pl.BlockSpec((Cmid, 9 * Cin), lambda n: (0, 0)),        # w1 (im2col layout)
            pl.BlockSpec((Cmid, 1), lambda n: (0, 0)),              # scale1
            pl.BlockSpec((Cmid, 1), lambda n: (0, 0)),              # bias1
            pl.BlockSpec((Cout, 9 * Cmid), lambda n: (0, 0)),       # w2 (im2col layout)
            pl.BlockSpec((Cout, 1), lambda n: (0, 0)),              # scale2
            pl.BlockSpec((Cout, 1), lambda n: (0, 0)),              # bias2
        ],
        out_specs=pl.BlockSpec((1, Cout, S), lambda n: (n, 0, 0)),
        scratch_shapes=[
            pltpu.VMEM((9 * Cin, S), jnp.float32),    # conv1 im2col patches
            pltpu.VMEM((9 * Cmid, S), jnp.float32),   # conv2 im2col patches
        ],
    )

    out_flat = pl.pallas_call(
        functools.partial(_down_kernel, wp=Wp),
        out_shape=jax.ShapeDtypeStruct((N, Cout, S), jnp.float32),
        grid_spec=grid_spec,
        compiler_params=pltpu.CompilerParams(
            dimension_semantics=("parallel",),
            vmem_limit_bytes=32 * 1024 * 1024,
        ),
    )(x_flat, sel, msk, w1r, s1, b1, w2r, s2, b2)

    return out_flat.reshape(N, Cout, Hp, Wp)         # free reshape back to NCHW


# ----------------------- pure-JAX reference (for verification) -----------------------
def _conv_bn_relu_ref(x, w, bconv, gamma, beta, mean, var):
    y = jax.lax.conv_general_dilated(
        x, w, window_strides=(1, 1), padding="SAME",
        dimension_numbers=("NCHW", "OIHW", "NCHW"))
    y = y + bconv.reshape(1, -1, 1, 1)
    scale = (gamma / jnp.sqrt(var + BN_EPS)).reshape(1, -1, 1, 1)
    y = (y - mean.reshape(1, -1, 1, 1)) * scale + beta.reshape(1, -1, 1, 1)
    return jnp.maximum(y, 0.0)


def down_ref(x, p):
    N, C, H, W = x.shape
    xp = x.reshape(N, C, H // 2, 2, W // 2, 2).max(axis=(3, 5))
    y = _conv_bn_relu_ref(xp, p["w1"], p["bc1"], p["g1"], p["be1"], p["m1"], p["v1"])
    y = _conv_bn_relu_ref(y, p["w2"], p["bc2"], p["g2"], p["be2"], p["m2"], p["v2"])
    return y


if __name__ == "__main__":
    key = jax.random.PRNGKey(0)
    N, Cin, H, W = 2, 4, 16, 16
    Cout = 8                      # DoubleConv: mid_channels == out_channels
    ks = jax.random.split(key, 13)

    x = jax.random.normal(ks[0], (N, Cin, H, W), jnp.float32)

    # Deterministic synthetic parameters (PyTorch layouts: OIHW conv weights + BN stats).
    p = dict(
        w1=0.2 * jax.random.normal(ks[1], (Cout, Cin, 3, 3), jnp.float32),
        bc1=0.1 * jax.random.normal(ks[2], (Cout,), jnp.float32),
        g1=1.0 + 0.1 * jax.random.normal(ks[3], (Cout,), jnp.float32),
        be1=0.1 * jax.random.normal(ks[4], (Cout,), jnp.float32),
        m1=0.1 * jax.random.normal(ks[5], (Cout,), jnp.float32),
        v1=0.5 + jnp.abs(jax.random.normal(ks[6], (Cout,), jnp.float32)),
        w2=0.2 * jax.random.normal(ks[7], (Cout, Cout, 3, 3), jnp.float32),
        bc2=0.1 * jax.random.normal(ks[8], (Cout,), jnp.float32),
        g2=1.0 + 0.1 * jax.random.normal(ks[9], (Cout,), jnp.float32),
        be2=0.1 * jax.random.normal(ks[10], (Cout,), jnp.float32),
        m2=0.1 * jax.random.normal(ks[11], (Cout,), jnp.float32),
        v2=0.5 + jnp.abs(jax.random.normal(ks[12], (Cout,), jnp.float32)),
    )

    out = jax.jit(down_pallas)(x, p)
    out = jax.block_until_ready(out)

    ref = jax.block_until_ready(down_ref(x, p))
    assert out.shape == (N, Cout, H // 2, W // 2), out.shape
    max_err = float(jnp.max(jnp.abs(out - ref)))
    assert jnp.allclose(out, ref, atol=5e-4, rtol=5e-4), max_err

    print("KERNEL_OK")
</pallas_src>

<mosaic_0001>
module attributes {stable_mosaic.version = 11 : i64} {
  func.func @_down_kernel(%arg0: i32, %arg1: memref<1x4x256xf32, #tpu.memory_space<vmem>>, %arg2: memref<256x64xf32, #tpu.memory_space<vmem>>, %arg3: memref<9x64xf32, #tpu.memory_space<vmem>>, %arg4: memref<8x36xf32, #tpu.memory_space<vmem>>, %arg5: memref<8x1xf32, #tpu.memory_space<vmem>>, %arg6: memref<8x1xf32, #tpu.memory_space<vmem>>, %arg7: memref<8x72xf32, #tpu.memory_space<vmem>>, %arg8: memref<8x1xf32, #tpu.memory_space<vmem>>, %arg9: memref<8x1xf32, #tpu.memory_space<vmem>>, %arg10: memref<1x8x64xf32, #tpu.memory_space<vmem>>, %arg11: memref<36x64xf32, #tpu.memory_space<vmem>>, %arg12: memref<72x64xf32, #tpu.memory_space<vmem>>) attributes {dimension_semantics = [#tpu.dimension_semantics<parallel>], iteration_bounds = array<i64: 2>, scalar_prefetch = 0 : i64, scratch_operands = 2 : i64, tpu.core_type = #tpu.core_type<tc>, window_params = [{transform_indices = @transform_0, window_bounds = array<i64: 1, 4, 256>}, {pipeline_mode = #tpu.pipeline_mode<synchronous>, transform_indices = @transform_1, window_bounds = array<i64: 256, 64>}, {pipeline_mode = #tpu.pipeline_mode<synchronous>, transform_indices = @transform_2, window_bounds = array<i64: 9, 64>}, {pipeline_mode = #tpu.pipeline_mode<synchronous>, transform_indices = @transform_3, window_bounds = array<i64: 8, 36>}, {pipeline_mode = #tpu.pipeline_mode<synchronous>, transform_indices = @transform_4, window_bounds = array<i64: 8, 1>}, {pipeline_mode = #tpu.pipeline_mode<synchronous>, transform_indices = @transform_5, window_bounds = array<i64: 8, 1>}, {pipeline_mode = #tpu.pipeline_mode<synchronous>, transform_indices = @transform_6, window_bounds = array<i64: 8, 72>}, {pipeline_mode = #tpu.pipeline_mode<synchronous>, transform_indices = @transform_7, window_bounds = array<i64: 8, 1>}, {pipeline_mode = #tpu.pipeline_mode<synchronous>, transform_indices = @transform_8, window_bounds = array<i64: 8, 1>}, {transform_indices = @transform_9, window_bounds = array<i64: 1, 8, 64>}]} {
    %c0 = arith.constant 0 : index
    %c0_0 = arith.constant 0 : index
    %c0_1 = arith.constant 0 : index
    %0 = vector.load %arg1[%c0, %c0_0, %c0_1] : memref<1x4x256xf32, #tpu.memory_space<vmem>>, vector<1x4x256xf32>
    %1 = vector.shape_cast %0 : vector<1x4x256xf32> to vector<4x256xf32>
    %2 = vector.extract_strided_slice %1 {offsets = [0, 1], sizes = [4, 255], strides = [1, 1]} : vector<4x256xf32> to vector<4x255xf32>
    %3 = vector.extract_strided_slice %1 {offsets = [0, 0], sizes = [4, 1], strides = [1, 1]} : vector<4x256xf32> to vector<4x1xf32>
    %4 = tpu.concatenate %2, %3 in 1 : vector<4x255xf32>, vector<4x1xf32> -> vector<4x256xf32>
    %5 = arith.maximumf %1, %4 : vector<4x256xf32>
    %6 = vector.extract_strided_slice %5 {offsets = [0, 16], sizes = [4, 240], strides = [1, 1]} : vector<4x256xf32> to vector<4x240xf32>
    %7 = vector.extract_strided_slice %5 {offsets = [0, 0], sizes = [4, 16], strides = [1, 1]} : vector<4x256xf32> to vector<4x16xf32>
    %8 = tpu.concatenate %6, %7 in 1 : vector<4x240xf32>, vector<4x16xf32> -> vector<4x256xf32>
    %9 = arith.maximumf %5, %8 : vector<4x256xf32>
    %c0_2 = arith.constant 0 : index
    %c0_3 = arith.constant 0 : index
    %10 = vector.load %arg2[%c0_2, %c0_3] : memref<256x64xf32, #tpu.memory_space<vmem>>, vector<256x64xf32>
    %cst = arith.constant dense<0.000000e+00> : vector<4x64xf32>
    %11 = tpu.matmul %9, %10, %cst {dimension_numbers = #tpu.dot_dimension_numbers<[1], [0], [0], [1], [0, 0, 1, 1], [], []>} : vector<4x256xf32>, vector<256x64xf32>, vector<4x64xf32> -> vector<4x64xf32>
    %12 = vector.extract_strided_slice %11 {offsets = [0, 55], sizes = [4, 9], strides = [1, 1]} : vector<4x64xf32> to vector<4x9xf32>
    %13 = vector.extract_strided_slice %11 {offsets = [0, 0], sizes = [4, 55], strides = [1, 1]} : vector<4x64xf32> to vector<4x55xf32>
    %14 = tpu.concatenate %12, %13 in 1 : vector<4x9xf32>, vector<4x55xf32> -> vector<4x64xf32>
    %c0_4 = arith.constant 0 : index
    %c0_5 = arith.constant 0 : index
    %15 = vector.load %arg3[%c0_4, %c0_5] : memref<9x64xf32, #tpu.memory_space<vmem>>, vector<1x64xf32>
    %16 = vector.broadcast %15 : vector<1x64xf32> to vector<4x64xf32>
    %17 = arith.mulf %14, %16 : vector<4x64xf32>
    %c0_6 = arith.constant 0 : index
    %c0_7 = arith.constant 0 : index
    %18 = vector.load %arg11[%c0_6, %c0_7] : memref<36x64xf32, #tpu.memory_space<vmem>>, vector<4x64xf32>
    tpu.vector_store %arg11[%c0_6, %c0_7], %17 {strides = array<i32>} : memref<36x64xf32, #tpu.memory_space<vmem>>, vector<4x64xf32>,
    %19 = vector.extract_strided_slice %11 {offsets = [0, 56], sizes = [4, 8], strides = [1, 1]} : vector<4x64xf32> to vector<4x8xf32>
    %20 = vector.extract_strided_slice %11 {offsets = [0, 0], sizes = [4, 56], strides = [1, 1]} : vector<4x64xf32> to vector<4x56xf32>
    %21 = tpu.concatenate %19, %20 in 1 : vector<4x8xf32>, vector<4x56xf32> -> vector<4x64xf32>
    %c1 = arith.constant 1 : index
    %c0_8 = arith.constant 0 : index
    %22 = vector.load %arg3[%c1, %c0_8] : memref<9x64xf32, #tpu.memory_space<vmem>>, vector<1x64xf32>
    %23 = vector.broadcast %22 : vector<1x64xf32> to vector<4x64xf32>
    %24 = arith.mulf %21, %23 : vector<4x64xf32>
    %c4 = arith.constant 4 : index
    %c0_9 = arith.constant 0 : index
    %25 = vector.load %arg11[%c4, %c0_9] : memref<36x64xf32, #tpu.memory_space<vmem>>, vector<4x64xf32>
    tpu.vector_store %arg11[%c4, %c0_9], %24 {strides = array<i32>} : memref<36x64xf32, #tpu.memory_space<vmem>>, vector<4x64xf32>,
    %26 = vector.extract_strided_slice %11 {offsets = [0, 57], sizes = [4, 7], strides = [1, 1]} : vector<4x64xf32> to vector<4x7xf32>
    %27 = vector.extract_strided_slice %11 {offsets = [0, 0], sizes = [4, 57], strides = [1, 1]} : vector<4x64xf32> to vector<4x57xf32>
    %28 = tpu.concatenate %26, %27 in 1 : vector<4x7xf32>, vector<4x57xf32> -> vector<4x64xf32>
    %c2 = arith.constant 2 : index
    %c0_10 = arith.constant 0 : index
    %29 = vector.load %arg3[%c2, %c0_10] : memref<9x64xf32, #tpu.memory_space<vmem>>, vector<1x64xf32>
    %30 = vector.broadcast %29 : vector<1x64xf32> to vector<4x64xf32>
    %31 = arith.mulf %28, %30 : vector<4x64xf32>
    %c8 = arith.constant 8 : index
    %c0_11 = arith.constant 0 : index
    %32 = vector.load %arg11[%c8, %c0_11] : memref<36x64xf32, #tpu.memory_space<vmem>>, vector<4x64xf32>
    tpu.vector_store %arg11[%c8, %c0_11], %31 {strides = array<i32>} : memref<36x64xf32, #tpu.memory_space<vmem>>, vector<4x64xf32>,
    %33 = vector.extract_strided_slice %11 {offsets = [0, 63], sizes = [4, 1], strides = [1, 1]} : vector<4x64xf32> to vector<4x1xf32>
    %34 = vector.extract_strided_slice %11 {offsets = [0, 0], sizes = [4, 63], strides = [1, 1]} : vector<4x64xf32> to vector<4x63xf32>
    %35 = tpu.concatenate %33, %34 in 1 : vector<4x1xf32>, vector<4x63xf32> -> vector<4x64xf32>
    %c3 = arith.constant 3 : index
    %c0_12 = arith.constant 0 : index
    %36 = vector.load %arg3[%c3, %c0_12] : memref<9x64xf32, #tpu.memory_space<vmem>>, vector<1x64xf32>
    %37 = vector.broadcast %36 : vector<1x64xf32> to vector<4x64xf32>
    %38 = arith.mulf %35, %37 : vector<4x64xf32>
    %c12 = arith.constant 12 : index
    %c0_13 = arith.constant 0 : index
    %39 = vector.load %arg11[%c12, %c0_13] : memref<36x64xf32, #tpu.memory_space<vmem>>, vector<4x64xf32>
    tpu.vector_store %arg11[%c12, %c0_13], %38 {strides = array<i32>} : memref<36x64xf32, #tpu.memory_space<vmem>>, vector<4x64xf32>,
    %c16 = arith.constant 16 : index
    %c0_14 = arith.constant 0 : index
    %40 = vector.load %arg11[%c16, %c0_14] : memref<36x64xf32, #tpu.memory_space<vmem>>, vector<4x64xf32>
    tpu.vector_store %arg11[%c16, %c0_14], %11 {strides = array<i32>} : memref<36x64xf32, #tpu.memory_space<vmem>>, vector<4x64xf32>,
    %41 = vector.extract_strided_slice %11 {offsets = [0, 1], sizes = [4, 63], strides = [1, 1]} : vector<4x64xf32> to vector<4x63xf32>
    %42 = vector.extract_strided_slice %11 {offsets = [0, 0], sizes = [4, 1], strides = [1, 1]} : vector<4x64xf32> to vector<4x1xf32>
    %43 = tpu.concatenate %41, %42 in 1 : vector<4x63xf32>, vector<4x1xf32> -> vector<4x64xf32>
    %c5 = arith.constant 5 : index
    %c0_15 = arith.constant 0 : index
    %44 = vector.load %arg3[%c5, %c0_15] : memref<9x64xf32, #tpu.memory_space<vmem>>, vector<1x64xf32>
    %45 = vector.broadcast %44 : vector<1x64xf32> to vector<4x64xf32>
    %46 = arith.mulf %43, %45 : vector<4x64xf32>
    %c20 = arith.constant 20 : index
    %c0_16 = arith.constant 0 : index
    %47 = vector.load %arg11[%c20, %c0_16] : memref<36x64xf32, #tpu.memory_space<vmem>>, vector<4x64xf32>
    tpu.vector_store %arg11[%c20, %c0_16], %46 {strides = array<i32>} : memref<36x64xf32, #tpu.memory_space<vmem>>, vector<4x64xf32>,
    %48 = vector.extract_strided_slice %11 {offsets = [0, 7], sizes = [4, 57], strides = [1, 1]} : vector<4x64xf32> to vector<4x57xf32>
    %49 = vector.extract_strided_slice %11 {offsets = [0, 0], sizes = [4, 7], strides = [1, 1]} : vector<4x64xf32> to vector<4x7xf32>
    %50 = tpu.concatenate %48, %49 in 1 : vector<4x57xf32>, vector<4x7xf32> -> vector<4x64xf32>
    %c6 = arith.constant 6 : index
    %c0_17 = arith.constant 0 : index
    %51 = vector.load %arg3[%c6, %c0_17] : memref<9x64xf32, #tpu.memory_space<vmem>>, vector<1x64xf32>
    %52 = vector.broadcast %51 : vector<1x64xf32> to vector<4x64xf32>
    %53 = arith.mulf %50, %52 : vector<4x64xf32>
    %c24 = arith.constant 24 : index
    %c0_18 = arith.constant 0 : index
    %54 = vector.load %arg11[%c24, %c0_18] : memref<36x64xf32, #tpu.memory_space<vmem>>, vector<4x64xf32>
    tpu.vector_store %arg11[%c24, %c0_18], %53 {strides = array<i32>} : memref<36x64xf32, #tpu.memory_space<vmem>>, vector<4x64xf32>,
    %55 = vector.extract_strided_slice %11 {offsets = [0, 8], sizes = [4, 56], strides = [1, 1]} : vector<4x64xf32> to vector<4x56xf32>
    %56 = vector.extract_strided_slice %11 {offsets = [0, 0], sizes = [4, 8], strides = [1, 1]} : vector<4x64xf32> to vector<4x8xf32>
    %57 = tpu.concatenate %55, %56 in 1 : vector<4x56xf32>, vector<4x8xf32> -> vector<4x64xf32>
    %c7 = arith.constant 7 : index
    %c0_19 = arith.constant 0 : index
    %58 = vector.load %arg3[%c7, %c0_19] : memref<9x64xf32, #tpu.memory_space<vmem>>, vector<1x64xf32>
    %59 = vector.broadcast %58 : vector<1x64xf32> to vector<4x64xf32>
    %60 = arith.mulf %57, %59 : vector<4x64xf32>
    %c28 = arith.constant 28 : index
    %c0_20 = arith.constant 0 : index
    %61 = vector.load %arg11[%c28, %c0_20] : memref<36x64xf32, #tpu.memory_space<vmem>>, vector<4x64xf32>
    tpu.vector_store %arg11[%c28, %c0_20], %60 {strides = array<i32>} : memref<36x64xf32, #tpu.memory_space<vmem>>, vector<4x64xf32>,
    %62 = vector.extract_strided_slice %11 {offsets = [0, 9], sizes = [4, 55], strides = [1, 1]} : vector<4x64xf32> to vector<4x55xf32>
    %63 = vector.extract_strided_slice %11 {offsets = [0, 0], sizes = [4, 9], strides = [1, 1]} : vector<4x64xf32> to vector<4x9xf32>
    %64 = tpu.concatenate %62, %63 in 1 : vector<4x55xf32>, vector<4x9xf32> -> vector<4x64xf32>
    %c8_21 = arith.constant 8 : index
    %c0_22 = arith.constant 0 : index
    %65 = vector.load %arg3[%c8_21, %c0_22] : memref<9x64xf32, #tpu.memory_space<vmem>>, vector<1x64xf32>
    %66 = vector.broadcast %65 : vector<1x64xf32> to vector<4x64xf32>
    %67 = arith.mulf %64, %66 : vector<4x64xf32>
    %c32 = arith.constant 32 : index
    %c0_23 = arith.constant 0 : index
    %68 = vector.load %arg11[%c32, %c0_23] : memref<36x64xf32, #tpu.memory_space<vmem>>, vector<4x64xf32>
    tpu.vector_store %arg11[%c32, %c0_23], %67 {strides = array<i32>} : memref<36x64xf32, #tpu.memory_space<vmem>>, vector<4x64xf32>,
    %c0_24 = arith.constant 0 : index
    %c0_25 = arith.constant 0 : index
    %69 = vector.load %arg11[%c0_24, %c0_25] : memref<36x64xf32, #tpu.memory_space<vmem>>, vector<36x64xf32>
    %c0_26 = arith.constant 0 : index
    %c0_27 = arith.constant 0 : index
    %70 = vector.load %arg4[%c0_26, %c0_27] : memref<8x36xf32, #tpu.memory_space<vmem>>, vector<8x36xf32>
    %cst_28 = arith.constant dense<0.000000e+00> : vector<8x64xf32>
    %71 = tpu.matmul %70, %69, %cst_28 {dimension_numbers = #tpu.dot_dimension_numbers<[1], [0], [0], [1], [0, 0, 1, 1], [], []>} : vector<8x36xf32>, vector<36x64xf32>, vector<8x64xf32> -> vector<8x64xf32>
    %c0_29 = arith.constant 0 : index
    %c0_30 = arith.constant 0 : index
    %72 = vector.load %arg5[%c0_29, %c0_30] : memref<8x1xf32, #tpu.memory_space<vmem>>, vector<8x1xf32>
    %73 = vector.broadcast %72 : vector<8x1xf32> to vector<8x64xf32>
    %74 = arith.mulf %71, %73 : vector<8x64xf32>
    %c0_31 = arith.constant 0 : index
    %c0_32 = arith.constant 0 : index
    %75 = vector.load %arg6[%c0_31, %c0_32] : memref<8x1xf32, #tpu.memory_space<vmem>>, vector<8x1xf32>
    %76 = vector.broadcast %75 : vector<8x1xf32> to vector<8x64xf32>
    %77 = arith.addf %74, %76 : vector<8x64xf32>
    %cst_33 = arith.constant 0.000000e+00 : f32
    %78 = vector.broadcast %cst_33 : f32 to vector<8x64xf32>
    %79 = arith.maximumf %77, %78 : vector<8x64xf32>
    %80 = vector.extract_strided_slice %79 {offsets = [0, 55], sizes = [8, 9], strides = [1, 1]} : vector<8x64xf32> to vector<8x9xf32>
    %81 = vector.extract_strided_slice %79 {offsets = [0, 0], sizes = [8, 55], strides = [1, 1]} : vector<8x64xf32> to vector<8x55xf32>
    %82 = tpu.concatenate %80, %81 in 1 : vector<8x9xf32>, vector<8x55xf32> -> vector<8x64xf32>
    %c0_34 = arith.constant 0 : index
    %c0_35 = arith.constant 0 : index
    %83 = vector.load %arg3[%c0_34, %c0_35] : memref<9x64xf32, #tpu.memory_space<vmem>>, vector<1x64xf32>
    %84 = vector.broadcast %83 : vector<1x64xf32> to vector<8x64xf32>
    %85 = arith.mulf %82, %84 : vector<8x64xf32>
    %c0_36 = arith.constant 0 : index
    %c0_37 = arith.constant 0 : index
    %86 = vector.load %arg12[%c0_36, %c0_37] : memref<72x64xf32, #tpu.memory_space<vmem>>, vector<8x64xf32>
    tpu.vector_store %arg12[%c0_36, %c0_37], %85 {strides = array<i32>} : memref<72x64xf32, #tpu.memory_space<vmem>>, vector<8x64xf32>,
    %87 = vector.extract_strided_slice %79 {offsets = [0, 56], sizes = [8, 8], strides = [1, 1]} : vector<8x64xf32> to vector<8x8xf32>
    %88 = vector.extract_strided_slice %79 {offsets = [0, 0], sizes = [8, 56], strides = [1, 1]} : vector<8x64xf32> to vector<8x56xf32>
    %89 = tpu.concatenate %87, %88 in 1 : vector<8x8xf32>, vector<8x56xf32> -> vector<8x64xf32>
    %c1_38 = arith.constant 1 : index
    %c0_39 = arith.constant 0 : index
    %90 = vector.load %arg3[%c1_38, %c0_39] : memref<9x64xf32, #tpu.memory_space<vmem>>, vector<1x64xf32>
    %91 = vector.broadcast %90 : vector<1x64xf32> to vector<8x64xf32>
    %92 = arith.mulf %89, %91 : vector<8x64xf32>
    %c8_40 = arith.constant 8 : index
    %c0_41 = arith.constant 0 : index
    %93 = vector.load %arg12[%c8_40, %c0_41] : memref<72x64xf32, #tpu.memory_space<vmem>>, vector<8x64xf32>
    tpu.vector_store %arg12[%c8_40, %c0_41], %92 {strides = array<i32>} : memref<72x64xf32, #tpu.memory_space<vmem>>, vector<8x64xf32>,
    %94 = vector.extract_strided_slice %79 {offsets = [0, 57], sizes = [8, 7], strides = [1, 1]} : vector<8x64xf32> to vector<8x7xf32>
    %95 = vector.extract_strided_slice %79 {offsets = [0, 0], sizes = [8, 57], strides = [1, 1]} : vector<8x64xf32> to vector<8x57xf32>
    %96 = tpu.concatenate %94, %95 in 1 : vector<8x7xf32>, vector<8x57xf32> -> vector<8x64xf32>
    %c2_42 = arith.constant 2 : index
    %c0_43 = arith.constant 0 : index
    %97 = vector.load %arg3[%c2_42, %c0_43] : memref<9x64xf32, #tpu.memory_space<vmem>>, vector<1x64xf32>
    %98 = vector.broadcast %97 : vector<1x64xf32> to vector<8x64xf32>
    %99 = arith.mulf %96, %98 : vector<8x64xf32>
    %c16_44 = arith.constant 16 : index
    %c0_45 = arith.constant 0 : index
    %100 = vector.load %arg12[%c16_44, %c0_45] : memref<72x64xf32, #tpu.memory_space<vmem>>, vector<8x64xf32>
    tpu.vector_store %arg12[%c16_44, %c0_45], %99 {strides = array<i32>} : memref<72x64xf32, #tpu.memory_space<vmem>>, vector<8x64xf32>,
    %101 = vector.extract_strided_slice %79 {offsets = [0, 63], sizes = [8, 1], strides = [1, 1]} : vector<8x64xf32> to vector<8x1xf32>
    %102 = vector.extract_strided_slice %79 {offsets = [0, 0], sizes = [8, 63], strides = [1, 1]} : vector<8x64xf32> to vector<8x63xf32>
    %103 = tpu.concatenate %101, %102 in 1 : vector<8x1xf32>, vector<8x63xf32> -> vector<8x64xf32>
    %c3_46 = arith.constant 3 : index
    %c0_47 = arith.constant 0 : index
    %104 = vector.load %arg3[%c3_46, %c0_47] : memref<9x64xf32, #tpu.memory_space<vmem>>, vector<1x64xf32>
    %105 = vector.broadcast %104 : vector<1x64xf32> to vector<8x64xf32>
    %106 = arith.mulf %103, %105 : vector<8x64xf32>
    %c24_48 = arith.constant 24 : index
    %c0_49 = arith.constant 0 : index
    %107 = vector.load %arg12[%c24_48, %c0_49] : memref<72x64xf32, #tpu.memory_space<vmem>>, vector<8x64xf32>
    tpu.vector_store %arg12[%c24_48, %c0_49], %106 {strides = array<i32>} : memref<72x64xf32, #tpu.memory_space<vmem>>, vector<8x64xf32>,
    %c32_50 = arith.constant 32 : index
    %c0_51 = arith.constant 0 : index
    %108 = vector.load %arg12[%c32_50, %c0_51] : memref<72x64xf32, #tpu.memory_space<vmem>>, vector<8x64xf32>
    tpu.vector_store %arg12[%c32_50, %c0_51], %79 {strides = array<i32>} : memref<72x64xf32, #tpu.memory_space<vmem>>, vector<8x64xf32>,
    %109 = vector.extract_strided_slice %79 {offsets = [0, 1], sizes = [8, 63], strides = [1, 1]} : vector<8x64xf32> to vector<8x63xf32>
    %110 = vector.extract_strided_slice %79 {offsets = [0, 0], sizes = [8, 1], strides = [1, 1]} : vector<8x64xf32> to vector<8x1xf32>
    %111 = tpu.concatenate %109, %110 in 1 : vector<8x63xf32>, vector<8x1xf32> -> vector<8x64xf32>
    %c5_52 = arith.constant 5 : index
    %c0_53 = arith.constant 0 : index
    %112 = vector.load %arg3[%c5_52, %c0_53] : memref<9x64xf32, #tpu.memory_space<vmem>>, vector<1x64xf32>
    %113 = vector.broadcast %112 : vector<1x64xf32> to vector<8x64xf32>
    %114 = arith.mulf %111, %113 : vector<8x64xf32>
    %c40 = arith.constant 40 : index
    %c0_54 = arith.constant 0 : index
    %115 = vector.load %arg12[%c40, %c0_54] : memref<72x64xf32, #tpu.memory_space<vmem>>, vector<8x64xf32>
    tpu.vector_store %arg12[%c40, %c0_54], %114 {strides = array<i32>} : memref<72x64xf32, #tpu.memory_space<vmem>>, vector<8x64xf32>,
    %116 = vector.extract_strided_slice %79 {offsets = [0, 7], sizes = [8, 57], strides = [1, 1]} : vector<8x64xf32> to vector<8x57xf32>
    %117 = vector.extract_strided_slice %79 {offsets = [0, 0], sizes = [8, 7], strides = [1, 1]} : vector<8x64xf32> to vector<8x7xf32>
    %118 = tpu.concatenate %116, %117 in 1 : vector<8x57xf32>, vector<8x7xf32> -> vector<8x64xf32>
    %c6_55 = arith.constant 6 : index
    %c0_56 = arith.constant 0 : index
    %119 = vector.load %arg3[%c6_55, %c0_56] : memref<9x64xf32, #tpu.memory_space<vmem>>, vector<1x64xf32>
    %120 = vector.broadcast %119 : vector<1x64xf32> to vector<8x64xf32>
    %121 = arith.mulf %118, %120 : vector<8x64xf32>
    %c48 = arith.constant 48 : index
    %c0_57 = arith.constant 0 : index
    %122 = vector.load %arg12[%c48, %c0_57] : memref<72x64xf32, #tpu.memory_space<vmem>>, vector<8x64xf32>
    tpu.vector_store %arg12[%c48, %c0_57], %121 {strides = array<i32>} : memref<72x64xf32, #tpu.memory_space<vmem>>, vector<8x64xf32>,
    %123 = vector.extract_strided_slice %79 {offsets = [0, 8], sizes = [8, 56], strides = [1, 1]} : vector<8x64xf32> to vector<8x56xf32>
    %124 = vector.extract_strided_slice %79 {offsets = [0, 0], sizes = [8, 8], strides = [1, 1]} : vector<8x64xf32> to vector<8x8xf32>
    %125 = tpu.concatenate %123, %124 in 1 : vector<8x56xf32>, vector<8x8xf32> -> vector<8x64xf32>
    %c7_58 = arith.constant 7 : index
    %c0_59 = arith.constant 0 : index
    %126 = vector.load %arg3[%c7_58, %c0_59] : memref<9x64xf32, #tpu.memory_space<vmem>>, vector<1x64xf32>
    %127 = vector.broadcast %126 : vector<1x64xf32> to vector<8x64xf32>
    %128 = arith.mulf %125, %127 : vector<8x64xf32>
    %c56 = arith.constant 56 : index
    %c0_60 = arith.constant 0 : index
    %129 = vector.load %arg12[%c56, %c0_60] : memref<72x64xf32, #tpu.memory_space<vmem>>, vector<8x64xf32>
    tpu.vector_store %arg12[%c56, %c0_60], %128 {strides = array<i32>} : memref<72x64xf32, #tpu.memory_space<vmem>>, vector<8x64xf32>,
    %130 = vector.extract_strided_slice %79 {offsets = [0, 9], sizes = [8, 55], strides = [1, 1]} : vector<8x64xf32> to vector<8x55xf32>
    %131 = vector.extract_strided_slice %79 {offsets = [0, 0], sizes = [8, 9], strides = [1, 1]} : vector<8x64xf32> to vector<8x9xf32>
    %132 = tpu.concatenate %130, %131 in 1 : vector<8x55xf32>, vector<8x9xf32> -> vector<8x64xf32>
    %c8_61 = arith.constant 8 : index
    %c0_62 = arith.constant 0 : index
    %133 = vector.load %arg3[%c8_61, %c0_62] : memref<9x64xf32, #tpu.memory_space<vmem>>, vector<1x64xf32>
    %134 = vector.broadcast %133 : vector<1x64xf32> to vector<8x64xf32>
    %135 = arith.mulf %132, %134 : vector<8x64xf32>
    %c64 = arith.constant 64 : index
    %c0_63 = arith.constant 0 : index
    %136 = vector.load %arg12[%c64, %c0_63] : memref<72x64xf32, #tpu.memory_space<vmem>>, vector<8x64xf32>
    tpu.vector_store %arg12[%c64, %c0_63], %135 {strides = array<i32>} : memref<72x64xf32, #tpu.memory_space<vmem>>, vector<8x64xf32>,
    %c0_64 = arith.constant 0 : index
    %c0_65 = arith.constant 0 : index
    %137 = vector.load %arg12[%c0_64, %c0_65] : memref<72x64xf32, #tpu.memory_space<vmem>>, vector<72x64xf32>
    %c0_66 = arith.constant 0 : index
    %c0_67 = arith.constant 0 : index
    %138 = vector.load %arg7[%c0_66, %c0_67] : memref<8x72xf32, #tpu.memory_space<vmem>>, vector<8x72xf32>
    %cst_68 = arith.constant dense<0.000000e+00> : vector<8x64xf32>
    %139 = tpu.matmul %138, %137, %cst_68 {dimension_numbers = #tpu.dot_dimension_numbers<[1], [0], [0], [1], [0, 0, 1, 1], [], []>} : vector<8x72xf32>, vector<72x64xf32>, vector<8x64xf32> -> vector<8x64xf32>
    %c0_69 = arith.constant 0 : index
    %c0_70 = arith.constant 0 : index
    %140 = vector.load %arg8[%c0_69, %c0_70] : memref<8x1xf32, #tpu.memory_space<vmem>>, vector<8x1xf32>
    %141 = vector.broadcast %140 : vector<8x1xf32> to vector<8x64xf32>
    %142 = arith.mulf %139, %141 : vector<8x64xf32>
    %c0_71 = arith.constant 0 : index
    %c0_72 = arith.constant 0 : index
    %143 = vector.load %arg9[%c0_71, %c0_72] : memref<8x1xf32, #tpu.memory_space<vmem>>, vector<8x1xf32>
    %144 = vector.broadcast %143 : vector<8x1xf32> to vector<8x64xf32>
    %145 = arith.addf %142, %144 : vector<8x64xf32>
    %cst_73 = arith.constant 0.000000e+00 : f32
    %146 = vector.broadcast %cst_73 : f32 to vector<8x64xf32>
    %147 = arith.maximumf %145, %146 : vector<8x64xf32>
    %c0_74 = arith.constant 0 : index
    %c0_75 = arith.constant 0 : index
    %c0_76 = arith.constant 0 : index
    %148 = vector.load %arg10[%c0_74, %c0_75, %c0_76] : memref<1x8x64xf32, #tpu.memory_space<vmem>>, vector<1x8x64xf32>
    %149 = vector.shape_cast %148 : vector<1x8x64xf32> to vector<8x64xf32>
    %150 = vector.shape_cast %147 : vector<8x64xf32> to vector<1x8x64xf32>
    tpu.vector_store %arg10[%c0_74, %c0_75, %c0_76], %150 {strides = array<i32>} : memref<1x8x64xf32, #tpu.memory_space<vmem>>, vector<1x8x64xf32>,
    return
  }
  func.func @transform_0(%arg0: i32) -> (i32, i32, i32) {
    %c0_i32 = arith.constant 0 : i32
    %c0_i32_0 = arith.constant 0 : i32
    %c0_i32_1 = arith.constant 0 : i32
    return %arg0, %c0_i32, %c0_i32_0 : i32, i32, i32
  }
  func.func @transform_1(%arg0: i32) -> (i32, i32) {
    %c0_i32 = arith.constant 0 : i32
    %c0_i32_0 = arith.constant 0 : i32
    %c0_i32_1 = arith.constant 0 : i32
    return %c0_i32, %c0_i32_0 : i32, i32
  }
  func.func @transform_2(%arg0: i32) -> (i32, i32) {
    %c0_i32 = arith.constant 0 : i32
    %c0_i32_0 = arith.constant 0 : i32
    %c0_i32_1 = arith.constant 0 : i32
    return %c0_i32, %c0_i32_0 : i32, i32
  }
  func.func @transform_3(%arg0: i32) -> (i32, i32) {
    %c0_i32 = arith.constant 0 : i32
    %c0_i32_0 = arith.constant 0 : i32
    %c0_i32_1 = arith.constant 0 : i32
    return %c0_i32, %c0_i32_0 : i32, i32
  }
  func.func @transform_4(%arg0: i32) -> (i32, i32) {
    %c0_i32 = arith.constant 0 : i32
    %c0_i32_0 = arith.constant 0 : i32
    %c0_i32_1 = arith.constant 0 : i32
    return %c0_i32, %c0_i32_0 : i32, i32
  }
  func.func @transform_5(%arg0: i32) -> (i32, i32) {
    %c0_i32 = arith.constant 0 : i32
    %c0_i32_0 = arith.constant 0 : i32
    %c0_i32_1 = arith.constant 0 : i32
    return %c0_i32, %c0_i32_0 : i32, i32
  }
  func.func @transform_6(%arg0: i32) -> (i32, i32) {
    %c0_i32 = arith.constant 0 : i32
    %c0_i32_0 = arith.constant 0 : i32
    %c0_i32_1 = arith.constant 0 : i32
    return %c0_i32, %c0_i32_0 : i32, i32
  }
  func.func @transform_7(%arg0: i32) -> (i32, i32) {
    %c0_i32 = arith.constant 0 : i32
    %c0_i32_0 = arith.constant 0 : i32
    %c0_i32_1 = arith.constant 0 : i32
    return %c0_i32, %c0_i32_0 : i32, i32
  }
  func.func @transform_8(%arg0: i32) -> (i32, i32) {
    %c0_i32 = arith.constant 0 : i32
    %c0_i32_0 = arith.constant 0 : i32
    %c0_i32_1 = arith.constant 0 : i32
    return %c0_i32, %c0_i32_0 : i32, i32
  }
  func.func @transform_9(%arg0: i32) -> (i32, i32, i32) {
    %c0_i32 = arith.constant 0 : i32
    %c0_i32_0 = arith.constant 0 : i32
    %c0_i32_1 = arith.constant 0 : i32
    return %arg0, %c0_i32, %c0_i32_0 : i32, i32, i32
  }
}

</mosaic_0001>

<bundles_post_ra>
// kernel: down_pallas.1
= control target key start
LH: loop header
LB: loop body
LE: loop exit
PB: predicated region body
PF: predicated region fallthrough
CT: control target
= control target key end

     0   :  { %s1181_s30 = smov 0   ;;  %s1468_s0 = inlined_call_operand.vmem [shape: f32[2,4,256], index: 0, kind: input, shape index: {}]   ;;  %s1469_s1 = inlined_call_operand.vmem [shape: f32[256,64], index: 1, kind: input, shape index: {}]   ;;  %s1470_s2 = inlined_call_operand.vmem [shape: f32[9,64], index: 2, kind: input, shape index: {}]   ;;  %s1471_s3 = inlined_call_operand.vmem [shape: f32[8,36], index: 3, kind: input, shape index: {}]   ;;  %s1472_s4 = inlined_call_operand.vmem [shape: f32[8,1], index: 4, kind: input, shape index: {}]   ;;  %s1473_s5 = inlined_call_operand.vmem [shape: f32[8,1], index: 5, kind: input, shape index: {}]   ;;  %s1474_s6 = inlined_call_operand.vmem [shape: f32[8,72], index: 6, kind: input, shape index: {}]   ;;  %s1475_s7 = inlined_call_operand.vmem [shape: f32[8,1], index: 7, kind: input, shape index: {}]   ;;  %s1476_s8 = inlined_call_operand.vmem [shape: f32[8,1], index: 8, kind: input, shape index: {}]   ;;  %s1477_s9 = inlined_call_operand.vmem [shape: f32[2,8,64], index: 9, kind: output, shape index: {}]  }
   0x1 LB: > { %s957_s10 = sadd.s32 4294967295, %s1109_s30   ;;  %p961_p0 = scmp.ge.s32.totalorder %s1109_s30, 1  ;;  %s1109_s30 = sphi %s1181_s30, %s19_s30  }
   0x2   : > { %p287_p1 = scmp.lt.s32.totalorder %s1109_s30, 3 }
   0x4   : > { %p288_p2 = pnand %p961_p0, %p287_p1 }
   0x5   : > { %p322_p3 = scmp.lt.s32.totalorder (!%p288_p2), %s957_s10, 1  ;;  %s1111_s15 = smov (!%p288_p2), 127  }
   0x6   : > { %291 = sbr.rel (%p288_p2) target bundleno = 1172 (0x494), region = 56  ;;  %s1112_s29 = smov (!%p288_p2), 112  }
   0x7   : > { %s1114_s12 = smov (!%p288_p2), 55   ;;  %s1115_s13 = smov (!%p288_p2), 119  }
   0x8   : > { %s1117_s16 = smov (!%p288_p2), 121   ;;  %s1118_s17 = smov (!%p288_p2), 56  }
   0x9   : > { %s1119_s18 = smov (!%p288_p2), 120   ;;  %s1120_s19 = smov (!%p288_p2), 63  }
   0xa   : > { %s1121_s20 = smov (!%p288_p2), 7   ;;  %s1481_s21 = smov (!%p288_p2), 71  }
   0xb   : > { %s1487_s10 = smov (!%p322_p3, %s957_s10), 1  ;;  %v393_v2 = vld [vmem:[%s1469_s1 + $0xf8] sm:$0xff]  ;;  %v392_v4 = vld [vmem:[%s1469_s1 + $0xf0] sm:$0xff]  ;;  %v391_v6 = vld [vmem:[%s1469_s1 + $0xe8] sm:$0xff]  ;;  %vm338_vm0 = vcmask 1039360   ;;  %vm353_vm1 = vcmask 916480  }
   0xc   : > { %s1478_s11 = sshll.u32 %s1487_s10, 3  ;;  %v377_v3 = vld [vmem:[%s1469_s1 + $0x78] sm:$0xff]  ;;  %987 = vmatprep.subr.mxu0 %v393_v2  ;;  %v376_v5 = vld [vmem:[%s1469_s1 + $0x70] sm:$0xff]  ;;  %v375_v7 = vld [vmem:[%s1469_s1 + $0x68] sm:$0xff]  ;;  %vm482_vm2 = vcmask 519168   ;;  %v1113_v50 = vmov 0.0  }
   0xd   : > { %s326_s14 = scalar_lea.vmem %s1468_s0, %s1478_s11  ;;  %988 = vmatpush3.msra.mxu0 %v377_v3  ;;  %v390_v8 = vld [vmem:[%s1469_s1 + $0xe0] sm:$0xff]  ;;  %v389_v10 = vld [vmem:[%s1469_s1 + $0xd8] sm:$0xff]  ;;  %v388_v12 = vld [vmem:[%s1469_s1 + $0xd0] sm:$0xff]  ;;  %1038 = vmatprep.subr.mxu1 %v1113_v50  ;;  %s1123_s22 = smov 1   ;;  %vm1127_vm3 = vmmov 0   ;;  %v1130_v52 = vmov 0  }
   0xe   : > { %v1197_v0 = vld [vmem:[%s326_s14] sm:$0xff]  ;;  %989 = vmatprep.subr.mxu0 %v392_v4  ;;  %v373_v11 = vld [vmem:[%s1469_s1 + $0x58] sm:$0xff]  ;;  %v372_v13 = vld [vmem:[%s1469_s1 + $0x50] sm:$0xff]  ;;  %s1116_s14 = smov 57   ;;  %s1124_s23 = smov 65   ;;  %1048 = vmatprep.mubr.msk.f32.mxu1 %vm1127_vm3, %v1113_v50  ;;  %vm581_vm4 = vcmask 449536  }
   0xf   : > { %334 = vrot.lane.b32.xlu0 %v1197_v0, %s1111_s15  ;;  %v333_v1 = vcombine.high %v1197_v0, %v1197_v0  ;;  %990 = vmatpush3.msra.mxu0 %v376_v5  ;;  %v374_v9 = vld [vmem:[%s1469_s1 + $0x60] sm:$0xff]  ;;  %v387_v14 = vld [vmem:[%s1469_s1 + $0xc8] sm:$0xff]  ;;  %v385_v18 = vld [vmem:[%s1469_s1 + $0xb8] sm:$0xff]  ;;  %s1479_s24 = smov 9   ;;  %s1480_s25 = smov 73   ;;  %vm551_vm5 = vcmask 465920  }
  0x10   : > { %991 = vmatprep.subr.mxu0 %v391_v6  ;;  %v371_v15 = vld [vmem:[%s1469_s1 + $0x48] sm:$0xff]  ;;  %v386_v16 = vld [vmem:[%s1469_s1 + $0xc0] sm:$0xff]  ;;  %v369_v19 = vld [vmem:[%s1469_s1 + $0x38] sm:$0xff]  ;;  %s1128_s26 = smov 8   ;;  %s1129_s27 = smov 72   ;;  %1100 = vset.pattern.permute.xlu0 %v1130_v52  ;;  %vm566_vm6 = vcmask 457728  }
  0x11   : > { %992 = vmatpush3.msra.mxu0 %v375_v7  ;;  %v370_v17 = vld [vmem:[%s1469_s1 + $0x40] sm:$0xff]  ;;  %v384_v20 = vld [vmem:[%s1469_s1 + $0xb0] sm:$0xff]  ;;  %v383_v22 = vld [vmem:[%s1469_s1 + $0xa8] sm:$0xff]  ;;  %1101 = vset.pattern.permute.xlu1 %v1130_v52  ;;  %vm600_vm7 = vcmask 1043456   ;;  %vm536_vm8 = vcmask 515072   ;;  %vm505_vm9 = vcmask 56320  }
  0x12   : > { %993 = vmatprep.subr.mxu0 %v390_v8  ;;  %v368_v21 = vld [vmem:[%s1469_s1 + $0x30] sm:$0xff]  ;;  %v367_v23 = vld [vmem:[%s1469_s1 + $0x28] sm:$0xff]  ;;  %v382_v24 = vld [vmem:[%s1469_s1 + $0xa0] sm:$0xff]  ;;  %vm520_vm10 = vcmask 7168   ;;  %vm474_vm11 = vcmask 72704   ;;  %vm490_vm12 = vcmask 64512  }
  0x13   : > { %336 = vrot.lane.b32.xlu0 %v333_v1, %s1111_s15  ;;  %994 = vmatpush3.msra.mxu0 %v374_v9  ;;  %v366_v25 = vld [vmem:[%s1469_s1 + $0x20] sm:$0xff]  ;;  %v381_v27 = vld [vmem:[%s1469_s1 + $0x98] sm:$0xff]  ;;  %v380_v29 = vld [vmem:[%s1469_s1 + $0x90] sm:$0xff]  ;;  %vm596_vm13 = vcmask 293888   ;;  %vm703_vm14 = vcmask 523264   ;;  %vm814_vm15 = vcmask 588800  }
  0x14   : > { %995 = vmatprep.subr.mxu0 %v389_v10  ;;  %v365_v28 = vld [vmem:[%s1469_s1 + $0x18] sm:$0xff]  ;;  %v364_v30 = vld [vmem:[%s1469_s1 + $0x10] sm:$0xff]  ;;  %v379_v31 = vld [vmem:[%s1469_s1 + $0x88] sm:$0xff] }
  0x15   : > { %996 = vmatpush3.msra.mxu0 %v373_v11  ;;  %v363_v32 = vld [vmem:[%s1469_s1 + $0x8] sm:$0xff]  ;;  %v378_v34 = vld [vmem:[%s1469_s1 + $0x80] sm:$0xff] }
  0x16   : > { %997 = vmatprep.subr.mxu0 %v388_v12  ;;  %v362_v37 = vld [vmem:[%s1469_s1] sm:$0xff]  ;;  %v1330_v55 = vld [vmem:[%s1470_s2 + $0x8] ss:$0 sm:$0xff] }
  0x17   : > { %998 = vmatpush3.msra.mxu0 %v372_v13  ;;  %v674_v53 = vld [vmem:[%s1472_s4] sm:$0xff] }
  0x18   : > { %999 = vmatprep.subr.mxu0 %v387_v14  ;;  %v681_v54 = vld [vmem:[%s1473_s5] sm:$0xff] }
  0x19   : > { %1000 = vmatpush3.msra.mxu0 %v371_v15  ;;  %v1337_v60 = vld [vmem:[%s1470_s2 + $0x6] ss:$0 sm:$0xff]  ;;  %v1345_v1 = vld [vmem:[%s1470_s2 + $0x7] ss:$0 sm:$0xff]  ;;  %v1353_v7 = vld [vmem:[%s1470_s2 + $0x5] ss:$0 sm:$0xff] }
  0x1a   : > { %1001 = vmatprep.subr.mxu0 %v386_v16  ;;  %v1362_v12 = vld [vmem:[%s1470_s2 + $0x2] ss:$0 sm:$0xff] }
  0x1b   : > { %1002 = vmatpush3.msra.mxu0 %v370_v17 }
  0x1c   : > { %1003 = vmatprep.subr.mxu0 %v385_v18  ;;  %v1370_v18 = vld [vmem:[%s1470_s2 + $0x3] ss:$0 sm:$0xff] }
  0x1d   : > { %1004 = vmatpush3.msra.mxu0 %v369_v19 }
  0x1e   : > { %1005 = vmatprep.subr.mxu0 %v384_v20 }
  0x1f   : > { %1006 = vmatpush3.msra.mxu0 %v368_v21 }
  0x20   : > { %1007 = vmatprep.subr.mxu0 %v383_v22 }
  0x21   : > { %1008 = vmatpush3.msra.mxu0 %v367_v23  ;;  %v1379_v23 = vld [vmem:[%s1470_s2] ss:$0 sm:$0xff] }
  0x22   : > { %1009 = vmatprep.subr.mxu0 %v382_v24 }
  0x23   : > { %1010 = vmatpush3.msra.mxu0 %v366_v25 }
  0x24   : > { %1011 = vmatprep.subr.mxu0 %v381_v27 }
  0x25   : > { %1012 = vmatpush3.msra.mxu0 %v365_v28 }
  0x26   : > { %1013 = vmatprep.subr.mxu0 %v380_v29  ;;  %v1388_v29 = vld [vmem:[%s1470_s2 + $0x1] ss:$0 sm:$0xff] }
  0x27   : > { %1014 = vmatpush3.msra.mxu0 %v364_v30 }
  0x28   : > { %1015 = vmatprep.subr.mxu0 %v379_v31 }
  0x29   : > { %1016 = vmatpush3.msra.mxu0 %v363_v32 }
  0x2a   : > { %1017 = vmatprep.subr.mxu0 %v378_v34 }
  0x2b   : > { %1018 = vmatpush3.msra.mxu0 %v362_v37 }
  0x81   : > { %v335_v26 = vpop.permute.xlu0 %334 }
  0x85   : > { %v337_v33 = vpop.permute.xlu0 %336 }
  0x86   : > { %v339_v35 = vsel %vm338_vm0, %v335_v26, %v337_v33  ;;  %v342_v36 = vsel %vm338_vm0, %v337_v33, %v335_v26 }
  0x87   : > { %v344_v38 = vcombine.low %v339_v35, %v342_v36  ;;  %v595_v35 = vld [vmem:[%s1471_s3] sm:$0xff] }
  0x89   : > { %v346_v39 = vmax.f32 %v1197_v0, %v344_v38 }
  0x8b   : > { %349 = vrot.lane.b32.xlu1 %v346_v39, %s1112_s29  ;;  %v348_v40 = vcombine.high %v346_v39, %v346_v39 }
  0x8f   : > { %351 = vrot.lane.b32.xlu1 %v348_v40, %s1112_s29 }
  0xfd   : > { %v350_v41 = vpop.permute.xlu1 %349 }
 0x101   : > { %v352_v42 = vpop.permute.xlu1 %351 }
 0x102   : > { %v354_v43 = vsel %vm353_vm1, %v350_v41, %v352_v42  ;;  %v357_v44 = vsel %vm353_vm1, %v352_v42, %v350_v41 }
 0x103   : > { %v359_v45 = vcombine.low %v354_v43, %v357_v44  ;;  %v895_v44 = vld [vmem:[%s1476_s8] sm:$0xff] }
 0x105   : > { %v361_v46 = vmax.f32 %v346_v39, %v359_v45  ;;  %v888_v45 = vld [vmem:[%s1475_s7] sm:$0xff] }
 0x107   : > { %v395_v47 = vcombine.high %v361_v46, %v361_v46 }
 0x109   : > { %461 = vmatprep.mubr.f32.mxu0 %v395_v47 }
 0x10a   : > { %462 = vmatmul.mubr.f32.vlgmr.msra.gmra.mxu0 %v361_v46 }
 0x1ca   : > { %v1019_v48 = vpop.f32.mrf.mxu0 }
 0x1cc   : > { %v1020_v49 = vpop.f32.mrf.mxu0 }
 0x1cd   : > { %v1021_v51 = vadd.f32 %v1020_v49, %v1019_v48 }
 0x1cf   : > { %578 = vrot.lane.b32.xlu1 %v1021_v51, %s1114_s12  ;;  %575 = vrot.lane.b32.xlu0 %v1021_v51, %s1115_s13  ;;  %529 = vst.msk [vmem:[#allocation2 + $0x10] sm:$0xf] %vm482_vm2, %v1021_v51 }
 0x1d3   : > { %548 = vrot.lane.b32.xlu1 %v1021_v51, %s1116_s14  ;;  %545 = vrot.lane.b32.xlu0 %v1021_v51, %s1117_s16 }
 0x1d7   : > { %563 = vrot.lane.b32.xlu1 %v1021_v51, %s1118_s17  ;;  %560 = vrot.lane.b32.xlu0 %v1021_v51, %s1119_s18 }
 0x1db   : > { %533 = vrot.lane.b32.xlu1 %v1021_v51, %s1120_s19  ;;  %530 = vrot.lane.b32.xlu0 %v1021_v51, %s1111_s15 }
 0x1df   : > { %502 = vrot.lane.b32.xlu1 %v1021_v51, %s1121_s20  ;;  %499 = vrot.lane.b32.xlu0 %v1021_v51, %s1481_s21 }
 0x1e3   : > { %517 = vrot.lane.b32.xlu1 %v1021_v51, %s1123_s22  ;;  %514 = vrot.lane.b32.xlu0 %v1021_v51, %s1124_s23 }
 0x1e7   : > { %471 = vrot.lane.b32.xlu1 %v1021_v51, %s1479_s24  ;;  %468 = vrot.lane.b32.xlu0 %v1021_v51, %s1480_s25 }
 0x1eb   : > { %487 = vrot.lane.b32.xlu1 %v1021_v51, %s1128_s26  ;;  %484 = vrot.lane.b32.xlu0 %v1021_v51, %s1129_s27 }
 0x1ef   : > { %677 = vperm.xlu0 %1100, %v674_v53   ;;  %684 = vperm.xlu1 %1101, %v681_v54  }
 0x241   : > { %v579_v56 = vpop.permute.xlu1 %578  ;;  %v576_v57 = vpop.permute.xlu0 %575 }
 0x242   : > { %v582_v58 = vsel %vm581_vm4, %v576_v57, %v579_v56 }
 0x243   : > { %v588_v59 = vmul.f32 %v1330_v55, %v582_v58 }
 0x245   : > { %589 = vst.msk [vmem:[#allocation2 + $0x20] sm:$0xf] %vm482_vm2, %v588_v59  ;;  %v549_v61 = vpop.permute.xlu1 %548  ;;  %v546_v62 = vpop.permute.xlu0 %545 }
 0x246   : > { %v552_v63 = vsel %vm551_vm5, %v546_v62, %v549_v61 }
 0x247   : > { %v558_v0 = vmul.f32 %v1337_v60, %v552_v63 }
 0x249   : > { %559 = vst.msk [vmem:[#allocation2 + $0x18] sm:$0xf] %vm482_vm2, %v558_v0  ;;  %v564_v2 = vpop.permute.xlu1 %563  ;;  %v561_v3 = vpop.permute.xlu0 %560 }
 0x24a   : > { %v567_v4 = vsel %vm566_vm6, %v561_v3, %v564_v2 }
 0x24b   : > { %v573_v5 = vmul.f32 %v1345_v1, %v567_v4 }
 0x24c   : > { %v594_v6 = vld [vmem:[#allocation2 + $0x20] sm:$0xf] }
 0x24d   : > { %574 = vst.msk [vmem:[#allocation2 + $0x1c] sm:$0xf] %vm482_vm2, %v573_v5  ;;  %v534_v8 = vpop.permute.xlu1 %533  ;;  %1039 = vmatpush3.msk.msra.mxu1 %vm600_vm7, %v594_v6  ;;  %v531_v9 = vpop.permute.xlu0 %530 }
 0x24e   : > { %v537_v10 = vsel %vm536_vm8, %v531_v9, %v534_v8  ;;  %1040 = vmatprep.subr.mxu1 %v1113_v50 }
 0x24f   : > { %v543_v11 = vmul.f32 %v1353_v7, %v537_v10 }
 0x251   : > { %544 = vst.msk [vmem:[#allocation2 + $0x14] sm:$0xf] %vm482_vm2, %v543_v11  ;;  %v503_v13 = vpop.permute.xlu1 %502  ;;  %v500_v14 = vpop.permute.xlu0 %499 }
 0x252   : > { %v506_v15 = vsel %vm505_vm9, %v500_v14, %v503_v13 }
 0x253   : > { %v512_v16 = vmul.f32 %v1362_v12, %v506_v15 }
 0x254   : > { %v593_v17 = vld [vmem:[#allocation2 + $0x18] sm:$0xff] }
 0x255   : > { %513 = vst.msk [vmem:[#allocation2 + $0x8] sm:$0xf] %vm482_vm2, %v512_v16  ;;  %v518_v19 = vpop.permute.xlu1 %517  ;;  %1041 = vmatpush3.msra.mxu1 %v593_v17  ;;  %v515_v20 = vpop.permute.xlu0 %514 }
 0x256   : > { %v521_v21 = vsel %vm520_vm10, %v515_v20, %v518_v19  ;;  %1042 = vmatprep.subr.mxu1 %v1113_v50 }
 0x257   : > { %v527_v22 = vmul.f32 %v1370_v18, %v521_v21 }
 0x258   : > { %v592_v24 = vld [vmem:[#allocation2 + $0x10] sm:$0xff] }
 0x259   : > { %528 = vst.msk [vmem:[#allocation2 + $0xc] sm:$0xf] %vm482_vm2, %v527_v22  ;;  %v472_v25 = vpop.permute.xlu1 %471  ;;  %v469_v26 = vpop.permute.xlu0 %468  ;;  %1043 = vmatpush3.msra.mxu1 %v592_v24  ;;  %v813_v24 = vld [vmem:[%s1474_s6] sm:$0xff] }
 0x25a   : > { %v475_v27 = vsel %vm474_vm11, %v469_v26, %v472_v25  ;;  %1044 = vmatprep.subr.mxu1 %v1113_v50 }
 0x25b   : > { %v481_v28 = vmul.f32 %v1379_v23, %v475_v27 }
 0x25d   : > { %483 = vst.msk [vmem:[#allocation2] sm:$0xf] %vm482_vm2, %v481_v28  ;;  %v488_v30 = vpop.permute.xlu1 %487  ;;  %v485_v31 = vpop.permute.xlu0 %484 }
 0x25e   : > { %v491_v32 = vsel %vm490_vm12, %v485_v31, %v488_v30 }
 0x25f   : > { %v497_v33 = vmul.f32 %v1388_v29, %v491_v32 }
 0x260   : > { %v591_v34 = vld [vmem:[#allocation2 + $0x8] sm:$0xff] }
 0x261   : > { %498 = vst.msk [vmem:[#allocation2 + $0x4] sm:$0xf] %vm482_vm2, %v497_v33  ;;  %1045 = vmatpush3.msra.mxu1 %v591_v34 }
 0x262   : > { %1046 = vmatprep.subr.mxu1 %v1113_v50 }
 0x268   : > { %v590_v36 = vld [vmem:[#allocation2] sm:$0xff] }
 0x269   : > { %1047 = vmatpush3.msra.mxu1 %v590_v36 }
 0x26a   : > { %1049 = vmatmul.mubr.msk.f32.vlgmr.msra.gmra.mxu1 %vm596_vm13, %v595_v35  ;;  %1051 = vmatprep.subr.mxu1 %v1113_v50  ;;  %v678_v37 = vpop.permute.xlu0 %677  ;;  %v685_v39 = vpop.permute.xlu1 %684 }
 0x26b   : > { %1069 = vmatprep.mubr.msk.f32.mxu1 %vm1127_vm3, %v1113_v50 }
 0x32a   : > { %v670_v38 = vpop.f32.mrf.mxu1 }
 0x32b   : > { %v680_v40 = vmul.f32 %v678_v37, %v670_v38 }
 0x32c   : > { %v1050_v41 = vpop.f32.mrf.mxu1 }
 0x32d   : > { %v687_v42 = vadd.f32 %v685_v39, %v680_v40 }
 0x32f   : > { %v688_v43 = vmax.f32 %v687_v42, 0.0 }
 0x331   : > { %793 = vrot.lane.b32.xlu0 %v688_v43, %s1114_s12  ;;  %790 = vrot.lane.b32.xlu1 %v688_v43, %s1115_s13  ;;  %747 = vst.msk [vmem:[#allocation3 + $0x20] sm:$0xff] %vm703_vm14, %v688_v43  ;;  %s1482_s12 = smov 71   ;;  %s1483_s13 = smov 9  }
 0x335   : > { %779 = vrot.lane.b32.xlu0 %v688_v43, %s1118_s17  ;;  %776 = vrot.lane.b32.xlu1 %v688_v43, %s1119_s18 }
 0x338   : > { %v808_v15 = vld [vmem:[#allocation3 + $0x20] sm:$0xff] }
 0x339   : > { %765 = vrot.lane.b32.xlu0 %v688_v43, %s1116_s14  ;;  %762 = vrot.lane.b32.xlu1 %v688_v43, %s1117_s16  ;;  %s1484_s14 = smov 73  }
 0x33d   : > { %751 = vrot.lane.b32.xlu0 %v688_v43, %s1120_s19  ;;  %748 = vrot.lane.b32.xlu1 %v688_v43, %s1111_s15 }
 0x341   : > { %736 = vrot.lane.b32.xlu0 %v688_v43, %s1123_s22  ;;  %733 = vrot.lane.b32.xlu1 %v688_v43, %s1124_s23  ;;  %s1485_s22 = sshll.u32 %s1487_s10, 3 }
 0x345   : > { %722 = vrot.lane.b32.xlu0 %v688_v43, %s1121_s20  ;;  %719 = vrot.lane.b32.xlu1 %v688_v43, %s1482_s12 }
 0x349   : > { %708 = vrot.lane.b32.xlu0 %v688_v43, %s1128_s26  ;;  %705 = vrot.lane.b32.xlu1 %v688_v43, %s1129_s27  ;;  %s330_s27 = scalar_lea.vmem %s1477_s9, %s1485_s22 }
 0x34d   : > { %693 = vrot.lane.b32.xlu0 %v688_v43, %s1483_s13  ;;  %690 = vrot.lane.b32.xlu1 %v688_v43, %s1484_s14 }
 0x351   : > { %898 = vperm.xlu0 %1100, %v895_v44   ;;  %891 = vperm.xlu1 %1101, %v888_v45  }
 0x3a3   : > { %v794_v46 = vpop.permute.xlu0 %793  ;;  %v791_v47 = vpop.permute.xlu1 %790 }
 0x3a4   : > { %v796_v48 = vsel %vm581_vm4, %v791_v47, %v794_v46 }
 0x3a5   : > { %v802_v49 = vmul.f32 %v1330_v55, %v796_v48 }
 0x3a7   : > { %803 = vst.msk [vmem:[#allocation3 + $0x40] sm:$0xff] %vm703_vm14, %v802_v49  ;;  %v780_v51 = vpop.permute.xlu0 %779  ;;  %v777_v52 = vpop.permute.xlu1 %776 }
 0x3a8   : > { %v782_v53 = vsel %vm566_vm6, %v777_v52, %v780_v51 }
 0x3a9   : > { %v788_v54 = vmul.f32 %v1345_v1, %v782_v53 }
 0x3ab   : > { %789 = vst.msk [vmem:[#allocation3 + $0x38] sm:$0xff] %vm703_vm14, %v788_v54  ;;  %v766_v56 = vpop.permute.xlu0 %765  ;;  %v763_v57 = vpop.permute.xlu1 %762 }
 0x3ac   : > { %v768_v58 = vsel %vm551_vm5, %v763_v57, %v766_v56 }
 0x3ad   : > { %v774_v59 = vmul.f32 %v1337_v60, %v768_v58 }
 0x3ae   : > { %v812_v61 = vld [vmem:[#allocation3 + $0x40] sm:$0xff] }
 0x3af   : > { %775 = vst.msk [vmem:[#allocation3 + $0x30] sm:$0xff] %vm703_vm14, %v774_v59  ;;  %v752_v55 = vpop.permute.xlu0 %751  ;;  %1052 = vmatpush3.msra.mxu1 %v812_v61  ;;  %v749_v62 = vpop.permute.xlu1 %748 }
 0x3b0   : > { %v754_v63 = vsel %vm536_vm8, %v749_v62, %v752_v55  ;;  %1053 = vmatprep.subr.mxu1 %v1113_v50 }
 0x3b1   : > { %v760_v0 = vmul.f32 %v1353_v7, %v754_v63 }
 0x3b2   : > { %v811_v1 = vld [vmem:[#allocation3 + $0x38] sm:$0xff] }
 0x3b3   : > { %761 = vst.msk [vmem:[#allocation3 + $0x28] sm:$0xff] %vm703_vm14, %v760_v0  ;;  %v737_v2 = vpop.permute.xlu0 %736  ;;  %1054 = vmatpush3.msra.mxu1 %v811_v1  ;;  %v734_v3 = vpop.permute.xlu1 %733 }
 0x3b4   : > { %v739_v60 = vsel %vm520_vm10, %v734_v3, %v737_v2  ;;  %1055 = vmatprep.subr.mxu1 %v1113_v50 }
 0x3b5   : > { %v745_v4 = vmul.f32 %v1370_v18, %v739_v60 }
 0x3b6   : > { %v810_v5 = vld [vmem:[#allocation3 + $0x30] sm:$0xff] }
 0x3b7   : > { %746 = vst.msk [vmem:[#allocation3 + $0x18] sm:$0xff] %vm703_vm14, %v745_v4  ;;  %v723_v6 = vpop.permute.xlu0 %722  ;;  %1056 = vmatpush3.msra.mxu1 %v810_v5  ;;  %v720_v8 = vpop.permute.xlu1 %719 }
 0x3b8   : > { %v725_v7 = vsel %vm505_vm9, %v720_v8, %v723_v6  ;;  %1057 = vmatprep.subr.mxu1 %v1113_v50 }
 0x3b9   : > { %v731_v9 = vmul.f32 %v1362_v12, %v725_v7 }
 0x3ba   : > { %v809_v10 = vld [vmem:[#allocation3 + $0x28] sm:$0xff] }
 0x3bb   : > { %732 = vst.msk [vmem:[#allocation3 + $0x10] sm:$0xff] %vm703_vm14, %v731_v9  ;;  %v709_v11 = vpop.permute.xlu0 %708  ;;  %1058 = vmatpush3.msra.mxu1 %v809_v10  ;;  %v706_v13 = vpop.permute.xlu1 %705 }
 0x3bc   : > { %v711_v14 = vsel %vm490_vm12, %v706_v13, %v709_v11  ;;  %1059 = vmatprep.subr.mxu1 %v1113_v50 }
 0x3bd   : > { %v717_v16 = vmul.f32 %v1388_v29, %v711_v14  ;;  %1060 = vmatpush3.msra.mxu1 %v808_v15 }
 0x3be   : > { %1061 = vmatprep.subr.mxu1 %v1113_v50  ;;  %v807_v17 = vld [vmem:[#allocation3 + $0x18] sm:$0xff] }
 0x3bf   : > { %718 = vst.msk [vmem:[#allocation3 + $0x8] sm:$0xff] %vm703_vm14, %v717_v16  ;;  %v694_v12 = vpop.permute.xlu0 %693  ;;  %v691_v18 = vpop.permute.xlu1 %690  ;;  %1062 = vmatpush3.msra.mxu1 %v807_v17 }
 0x3c0   : > { %v696_v19 = vsel %vm474_vm11, %v691_v18, %v694_v12  ;;  %1063 = vmatprep.subr.mxu1 %v1113_v50 }
 0x3c1   : > { %v702_v20 = vmul.f32 %v1379_v23, %v696_v19 }
 0x3c2   : > { %v806_v21 = vld [vmem:[#allocation3 + $0x10] sm:$0xff] }
 0x3c3   : > { %704 = vst.msk [vmem:[#allocation3] sm:$0xff] %vm703_vm14, %v702_v20  ;;  %1064 = vmatpush3.msra.mxu1 %v806_v21 }
 0x3c4   : > { %1065 = vmatprep.subr.mxu1 %v1113_v50 }
 0x3c6   : > { %v805_v22 = vld [vmem:[#allocation3 + $0x8] sm:$0xff] }
 0x3c7   : > { %1066 = vmatpush3.msra.mxu1 %v805_v22 }
 0x3c8   : > { %1067 = vmatprep.subr.mxu1 %v1113_v50 }
 0x3ca   : > { %v804_v25 = vld [vmem:[#allocation3] sm:$0xff] }
 0x3cb   : > { %1068 = vmatpush3.msra.mxu1 %v804_v25 }
 0x3cc   : > { %1070 = vmatmul.mubr.msk.f32.vlgmr.msra.gmra.mxu1 %vm814_vm15, %v813_v24  ;;  %v892_v23 = vpop.permute.xlu1 %891  ;;  %v899_v28 = vpop.permute.xlu0 %898 }
 0x48c   : > { %v884_v26 = vpop.f32.mrf.mxu1 }
 0x48d   : > { %v894_v27 = vmul.f32 %v892_v23, %v884_v26 }
 0x48e   : > { %v1071_v29 = vpop.f32.mrf.mxu1 }
 0x48f   : > { %v901_v30 = vadd.f32 %v899_v28, %v894_v27 }
 0x491   : > { %v902_v50 = vmax.f32 %v901_v30, 0.0 }
 0x493   : > { %903 = vst.msk [vmem:[%s330_s27] sm:$0xff] %vm703_vm14, %v902_v50 }
 0x494 PF: > { %s19_s30 = sadd.s32 1, %s1109_s30  }
 0x495   : > { %p16_p4 = scmp.ge.s32.totalorder %s19_s30, 4  }
 0x497   :  { %18 = sbr.rel (!%p16_p4) target bundleno = 1 (0x1), region = 86 }

</bundles_post_ra>
